<compile_context>
chip_gen: v7x
topology: tpu7x:2x2x1
jax: 0.10.0
libtpu: 0.0.40
codegen_flags: <defaults>
</compile_context>

<pallas_src>
import jax
import jax.numpy as jnp
import numpy as np
from jax import lax
from jax.experimental import pallas as pl
from jax.experimental.pallas import tpu as pltpu

FOCAL_ALPHA = 0.25
FOCAL_GAMMA = 2.0  # gamma == 2.0 exactly -> implemented as a square


def _acos01(x):
    """acos(x) for x in [0, 1] (Abramowitz & Stegun 4.4.45, abs err <= 2e-8)."""
    p = jnp.float32(-0.0012624911)
    p = p * x + jnp.float32(0.0066700901)
    p = p * x + jnp.float32(-0.0170881256)
    p = p * x + jnp.float32(0.0308918810)
    p = p * x + jnp.float32(-0.0501743046)
    p = p * x + jnp.float32(0.0889789874)
    p = p * x + jnp.float32(-0.2145988016)
    p = p * x + jnp.float32(1.5707963050)
    return jnp.sqrt(jnp.maximum(1.0 - x, 0.0)) * p


def _bbox3d_loss_kernel(pb_ref, gb_ref, pc_ref, gc_ref, out_ref,
                        c_acc, s_acc, r_acc, f_acc, n_acc):
    step = pl.program_id(1)

    @pl.when(step == 0)
    def _init():
        z = jnp.zeros_like(c_acc)
        c_acc[...] = z
        s_acc[...] = z
        r_acc[...] = z
        f_acc[...] = z
        n_acc[...] = z

    pb = pb_ref[...]          # (16, TM) f32: rows 0-2 centers, 3-5 sizes, 8-11 quats
    gb = gb_ref[...]          # (16, TM) f32
    pc = pc_ref[...]          # (1, TM)  f32, values in (0, 1)
    gc = gc_ref[...]          # (1, TM)  f32 (padding lanes are 0)

    is_pos = gc > 0.5
    valid = is_pos.astype(jnp.float32)           # (1, TM)

    # ---- center loss: smooth L1 (beta = 1.0), masked per-lane partial sums ----
    dc = pb[0:3, :] - gb[0:3, :]
    adc = jnp.abs(dc)
    sl1_c = jnp.where(adc < 1.0, 0.5 * dc * dc, adc - 0.5)
    c_acc[...] += jnp.sum(sl1_c, axis=0, keepdims=True) * valid

    # ---- size loss: smooth L1 on log(clamp(size, min=0.01)) ----
    lp = jnp.log(jnp.maximum(pb[3:6, :], 0.01))
    lg = jnp.log(jnp.maximum(gb[3:6, :], 0.01))
    ds = lp - lg
    ads = jnp.abs(ds)
    sl1_s = jnp.where(ads < 1.0, 0.5 * ds * ds, ads - 0.5)
    s_acc[...] += jnp.sum(sl1_s, axis=0, keepdims=True) * valid

    # ---- rotation: acos(clip(|<q_p_hat, q_g_hat>|, 0, 1)), masked, in-kernel ----
    pq = pb[8:12, :]
    gq = gb[8:12, :]
    pg = jnp.sum(pq * gq, axis=0, keepdims=True)
    pp = jnp.sum(pq * pq, axis=0, keepdims=True)
    gg = jnp.sum(gq * gq, axis=0, keepdims=True)
    # fused 1/(|p||g|) via one rsqrt; clamp avoids NaN on all-zero (padded) quats.
    inv = lax.rsqrt(jnp.maximum(pp * gg, 1e-24))
    cos = jnp.clip(jnp.abs(pg) * inv, 0.0, 1.0)
    r_acc[...] += _acos01(cos) * valid

    # ---- confidence focal loss (target = valid mask); single-log BCE form ----
    p_sel = jnp.where(is_pos, pc, 1.0 - pc)          # == p_t
    ce = -jnp.maximum(jnp.log(p_sel), -100.0)        # PyTorch BCE clamps log at -100
    alpha_t = jnp.where(is_pos, FOCAL_ALPHA, 1.0 - FOCAL_ALPHA)
    one_m = 1.0 - p_sel
    f_acc[...] += alpha_t * one_m * one_m * ce       # (1 - p_t) ** 2.0

    n_acc[...] += valid

    @pl.when(step == pl.num_programs(1) - 1)
    def _finish():
        tm = c_acc.shape[-1]

        def fold(v):              # (1, TM) -> (1, 128) lane-partial sums
            r = v[:, 0:128]
            for g in range(1, tm // 128):
                r = r + v[:, g * 128:(g + 1) * 128]
            return r

        out_ref[...] = jnp.concatenate(
            [fold(c_acc[...]), fold(s_acc[...]), fold(r_acc[...]),
             fold(f_acc[...]), fold(n_acc[...]),
             jnp.zeros((3, 128), jnp.float32)], axis=0)


def _round_up(x, m):
    return (x + m - 1) // m * m


def bbox3d_loss(pred_bbox, pred_conf, gt_bbox, gt_conf, *, lanes_per_block=2048):
    B, N, D = pred_bbox.shape
    assert D == 10
    M = B * N
    f32 = jnp.float32

    lanes = _round_up(M, 128)
    tm = min(lanes_per_block, lanes)               # multiple of 128
    chunks = pl.cdiv(lanes, tm)
    nc = 2 if chunks >= 2 else 1                   # 2-TC split on megacore chips
    steps = pl.cdiv(chunks, nc)
    m_pad = nc * steps * tm

    def to_soa(x):
        # (B, N, 10) -> (16, m_pad): rows 0-2 centers, 3-5 sizes, 8-11 quats so every
        # slice the kernel takes stays inside a single (8, 128) sublane tile.
        x = x.reshape(M, 10).astype(f32)
        x = jnp.pad(x, ((0, m_pad - M), (0, 0)))
        x16 = jnp.concatenate(
            [x[:, 0:6], jnp.zeros((m_pad, 2), f32),
             x[:, 6:10], jnp.zeros((m_pad, 4), f32)], axis=1)
        # TODO(synk): this transpose is the one remaining extra HBM pass over the bbox
        # tensors; a producer that emits SoA (16, M) directly would remove it.
        return x16.T

    pb = to_soa(pred_bbox)
    gb = to_soa(gt_bbox)
    pc = jnp.pad(pred_conf.reshape(1, M).astype(f32), ((0, 0), (0, m_pad - M)))
    gc = jnp.pad(gt_conf.reshape(1, M).astype(f32), ((0, 0), (0, m_pad - M)))

    bbox_spec = pl.BlockSpec((16, tm), lambda c, s: (0, c * steps + s))
    conf_spec = pl.BlockSpec((1, tm), lambda c, s: (0, c * steps + s))
    out_spec = pl.BlockSpec((None, 8, 128), lambda c, s: (c, 0, 0))

    sums = pl.pallas_call(
        _bbox3d_loss_kernel,
        out_shape=jax.ShapeDtypeStruct((nc, 8, 128), f32),
        grid_spec=pltpu.PrefetchScalarGridSpec(
            num_scalar_prefetch=0,
            grid=(nc, steps),
            in_specs=[bbox_spec, bbox_spec, conf_spec, conf_spec],
            out_specs=out_spec,
            scratch_shapes=[pltpu.VMEM((1, tm), f32)] * 5),
        compiler_params=pltpu.CompilerParams(
            dimension_semantics=("parallel", "arbitrary")),
    )(pb, gb, pc, gc)

    totals = jnp.sum(sums, axis=(0, 2))            # (8,) final cross-core/lane reduce
    center_sum = totals[0]
    size_sum = totals[1]
    angle_sum = totals[2]
    focal_sum = totals[3]
    count = totals[4]

    has_valid = count > 0.0
    denom = jnp.maximum(count, 1.0)
    center_loss = jnp.where(has_valid, center_sum / (denom * 3.0), 0.0)
    size_loss = jnp.where(has_valid, size_sum / (denom * 3.0), 0.0)
    rotation_loss = jnp.where(has_valid, angle_sum / denom, 0.0)
    conf_loss = focal_sum / M                      # mean over the original B*N boxes
    bbox_loss = center_loss + size_loss + rotation_loss
    total_loss = 5.0 * bbox_loss + conf_loss
    return {
        'total_loss': total_loss,
        'bbox_loss': bbox_loss,
        'center_loss': center_loss,
        'size_loss': size_loss,
        'rotation_loss': rotation_loss,
        'conf_loss': conf_loss,
    }


# --------------------- pure-JAX reference (mirrors the PyTorch module) ---------------------
def _ref_loss(pred_bbox, pred_conf, gt_bbox, gt_conf):
    valid = gt_conf > 0.5
    vf = valid.astype(jnp.float32)
    cnt = jnp.sum(vf)

    def sl1(a, b):
        d = a - b
        ad = jnp.abs(d)
        return jnp.where(ad < 1.0, 0.5 * d * d, ad - 0.5)

    center = jnp.sum(sl1(pred_bbox[..., :3], gt_bbox[..., :3]) * vf[..., None]) / jnp.maximum(cnt * 3, 1)
    ps = jnp.log(jnp.maximum(pred_bbox[..., 3:6], 0.01))
    gs = jnp.log(jnp.maximum(gt_bbox[..., 3:6], 0.01))
    size = jnp.sum(sl1(ps, gs) * vf[..., None]) / jnp.maximum(cnt * 3, 1)

    pq = pred_bbox[..., 6:10]
    gq = gt_bbox[..., 6:10]
    pqn = pq / jnp.maximum(jnp.linalg.norm(pq, axis=-1, keepdims=True), 1e-12)
    gqn = gq / jnp.maximum(jnp.linalg.norm(gq, axis=-1, keepdims=True), 1e-12)
    cos = jnp.clip(jnp.abs(jnp.sum(pqn * gqn, axis=-1)), 0.0, 1.0)
    rot = jnp.sum(jnp.arccos(cos) * vf) / jnp.maximum(cnt, 1)

    t = vf
    ce = -(t * jnp.maximum(jnp.log(pred_conf), -100.0)
           + (1 - t) * jnp.maximum(jnp.log(1 - pred_conf), -100.0))
    p_t = pred_conf * t + (1 - pred_conf) * (1 - t)
    alpha_t = FOCAL_ALPHA * t + (1 - FOCAL_ALPHA) * (1 - t)
    conf = jnp.mean(alpha_t * jnp.square(1 - p_t) * ce)

    center = jnp.where(cnt > 0, center, 0.0)
    size = jnp.where(cnt > 0, size, 0.0)
    rot = jnp.where(cnt > 0, rot, 0.0)
    bbox = center + size + rot
    return {'total_loss': 5.0 * bbox + conf, 'bbox_loss': bbox, 'center_loss': center,
            'size_loss': size, 'rotation_loss': rot, 'conf_loss': conf}


if __name__ == "__main__":
    key = jax.random.PRNGKey(0)
    ks = jax.random.split(key, 8)
    B, N = 2, 8

    pred_centers = jax.random.normal(ks[0], (B, N, 3), jnp.float32)
    pred_sizes = jnp.abs(jax.random.normal(ks[1], (B, N, 3), jnp.float32)) + 0.1
    pred_quats = jax.random.normal(ks[2], (B, N, 4), jnp.float32)
    pred_bbox = jnp.concatenate([pred_centers, pred_sizes, pred_quats], axis=-1)
    pred_conf = jax.nn.sigmoid(jax.random.normal(ks[3], (B, N), jnp.float32))

    gt_centers = jax.random.normal(ks[4], (B, N, 3), jnp.float32)
    gt_sizes = jnp.abs(jax.random.normal(ks[5], (B, N, 3), jnp.float32)) + 0.1
    gt_quats = jax.random.normal(ks[6], (B, N, 4), jnp.float32)
    gt_bbox = jnp.concatenate([gt_centers, gt_sizes, gt_quats], axis=-1)
    gt_conf = jax.random.uniform(ks[7], (B, N), jnp.float32)
    gt_conf = gt_conf.at[0, 0].set(0.9)   # guarantee at least one valid box

    out = bbox3d_loss(pred_bbox, pred_conf, gt_bbox, gt_conf)
    out = jax.tree_util.tree_map(jax.block_until_ready, out)
    ref = _ref_loss(pred_bbox, pred_conf, gt_bbox, gt_conf)
    for k in out:
        np.testing.assert_allclose(np.asarray(out[k]), np.asarray(ref[k]),
                                   rtol=1e-5, atol=2e-5)

    # no-valid-box path: all gt_conf <= 0.5 -> bbox terms 0, total == conf_loss
    gt_conf0 = gt_conf * 0.3
    out0 = bbox3d_loss(pred_bbox, pred_conf, gt_bbox, gt_conf0)
    out0 = jax.tree_util.tree_map(jax.block_until_ready, out0)
    ref0 = _ref_loss(pred_bbox, pred_conf, gt_bbox, gt_conf0)
    for k in out0:
        np.testing.assert_allclose(np.asarray(out0[k]), np.asarray(ref0[k]),
                                   rtol=1e-5, atol=2e-5)

    print("KERNEL_OK")
</pallas_src>

<mosaic_0001>
module attributes {stable_mosaic.version = 11 : i64} {
  func.func @_bbox3d_loss_kernel(%arg0: i32, %arg1: i32, %arg2: memref<16x128xf32, #tpu.memory_space<vmem>>, %arg3: memref<16x128xf32, #tpu.memory_space<vmem>>, %arg4: memref<1x128xf32, #tpu.memory_space<vmem>>, %arg5: memref<1x128xf32, #tpu.memory_space<vmem>>, %arg6: memref<1x8x128xf32, #tpu.memory_space<vmem>>, %arg7: memref<1x128xf32, #tpu.memory_space<vmem>>, %arg8: memref<1x128xf32, #tpu.memory_space<vmem>>, %arg9: memref<1x128xf32, #tpu.memory_space<vmem>>, %arg10: memref<1x128xf32, #tpu.memory_space<vmem>>, %arg11: memref<1x128xf32, #tpu.memory_space<vmem>>) attributes {dimension_semantics = [#tpu.dimension_semantics<parallel>, #tpu.dimension_semantics<arbitrary>], iteration_bounds = array<i64: 1, 1>, scalar_prefetch = 0 : i64, scratch_operands = 5 : i64, tpu.core_type = #tpu.core_type<tc>, window_params = [{transform_indices = @transform_0, window_bounds = array<i64: 16, 128>}, {transform_indices = @transform_1, window_bounds = array<i64: 16, 128>}, {transform_indices = @transform_2, window_bounds = array<i64: 1, 128>}, {transform_indices = @transform_3, window_bounds = array<i64: 1, 128>}, {transform_indices = @transform_4, window_bounds = array<i64: 1, 8, 128>}]} {
    %c0_i32 = arith.constant 0 : i32
    %0 = arith.cmpi eq, %arg1, %c0_i32 : i32
    %1 = arith.extui %0 : i1 to i32
    %c0_i32_0 = arith.constant 0 : i32
    %2 = arith.cmpi ne, %1, %c0_i32_0 : i32
    scf.if %2 {
      %cst_62 = arith.constant 0.000000e+00 : f32
      %131 = vector.broadcast %cst_62 : f32 to vector<1x128xf32>
      %c0_63 = arith.constant 0 : index
      %c0_64 = arith.constant 0 : index
      %132 = vector.load %arg7[%c0_63, %c0_64] : memref<1x128xf32, #tpu.memory_space<vmem>>, vector<1x128xf32>
      tpu.vector_store %arg7[%c0_63, %c0_64], %131 {strides = array<i32>} : memref<1x128xf32, #tpu.memory_space<vmem>>, vector<1x128xf32>,
      %c0_65 = arith.constant 0 : index
      %c0_66 = arith.constant 0 : index
      %133 = vector.load %arg8[%c0_65, %c0_66] : memref<1x128xf32, #tpu.memory_space<vmem>>, vector<1x128xf32>
      tpu.vector_store %arg8[%c0_65, %c0_66], %131 {strides = array<i32>} : memref<1x128xf32, #tpu.memory_space<vmem>>, vector<1x128xf32>,
      %c0_67 = arith.constant 0 : index
      %c0_68 = arith.constant 0 : index
      %134 = vector.load %arg9[%c0_67, %c0_68] : memref<1x128xf32, #tpu.memory_space<vmem>>, vector<1x128xf32>
      tpu.vector_store %arg9[%c0_67, %c0_68], %131 {strides = array<i32>} : memref<1x128xf32, #tpu.memory_space<vmem>>, vector<1x128xf32>,
      %c0_69 = arith.constant 0 : index
      %c0_70 = arith.constant 0 : index
      %135 = vector.load %arg10[%c0_69, %c0_70] : memref<1x128xf32, #tpu.memory_space<vmem>>, vector<1x128xf32>
      tpu.vector_store %arg10[%c0_69, %c0_70], %131 {strides = array<i32>} : memref<1x128xf32, #tpu.memory_space<vmem>>, vector<1x128xf32>,
      %c0_71 = arith.constant 0 : index
      %c0_72 = arith.constant 0 : index
      %136 = vector.load %arg11[%c0_71, %c0_72] : memref<1x128xf32, #tpu.memory_space<vmem>>, vector<1x128xf32>
      tpu.vector_store %arg11[%c0_71, %c0_72], %131 {strides = array<i32>} : memref<1x128xf32, #tpu.memory_space<vmem>>, vector<1x128xf32>,
    } else {
    }
    %c0 = arith.constant 0 : index
    %c0_1 = arith.constant 0 : index
    %3 = vector.load %arg2[%c0, %c0_1] : memref<16x128xf32, #tpu.memory_space<vmem>>, vector<16x128xf32>
    %c0_2 = arith.constant 0 : index
    %c0_3 = arith.constant 0 : index
    %4 = vector.load %arg3[%c0_2, %c0_3] : memref<16x128xf32, #tpu.memory_space<vmem>>, vector<16x128xf32>
    %c0_4 = arith.constant 0 : index
    %c0_5 = arith.constant 0 : index
    %5 = vector.load %arg4[%c0_4, %c0_5] : memref<1x128xf32, #tpu.memory_space<vmem>>, vector<1x128xf32>
    %c0_6 = arith.constant 0 : index
    %c0_7 = arith.constant 0 : index
    %6 = vector.load %arg5[%c0_6, %c0_7] : memref<1x128xf32, #tpu.memory_space<vmem>>, vector<1x128xf32>
    %cst = arith.constant 5.000000e-01 : f32
    %7 = vector.broadcast %cst : f32 to vector<1x128xf32>
    %8 = arith.cmpf ogt, %6, %7 : vector<1x128xf32>
    %9 = arith.extui %8 : vector<1x128xi1> to vector<1x128xi32>
    %10 = arith.sitofp %9 : vector<1x128xi32> to vector<1x128xf32>
    %11 = vector.extract_strided_slice %3 {offsets = [0, 0], sizes = [3, 128], strides = [1, 1]} : vector<16x128xf32> to vector<3x128xf32>
    %12 = vector.extract_strided_slice %4 {offsets = [0, 0], sizes = [3, 128], strides = [1, 1]} : vector<16x128xf32> to vector<3x128xf32>
    %13 = arith.subf %11, %12 : vector<3x128xf32>
    %14 = math.absf %13 : vector<3x128xf32>
    %cst_8 = arith.constant 1.000000e+00 : f32
    %15 = vector.broadcast %cst_8 : f32 to vector<3x128xf32>
    %16 = arith.cmpf olt, %14, %15 : vector<3x128xf32>
    %cst_9 = arith.constant 5.000000e-01 : f32
    %17 = vector.broadcast %cst_9 : f32 to vector<3x128xf32>
    %18 = arith.mulf %17, %13 : vector<3x128xf32>
    %19 = arith.mulf %18, %13 : vector<3x128xf32>
    %cst_10 = arith.constant 5.000000e-01 : f32
    %20 = vector.broadcast %cst_10 : f32 to vector<3x128xf32>
    %21 = arith.subf %14, %20 : vector<3x128xf32>
    %22 = arith.select %16, %19, %21 : vector<3x128xi1>, vector<3x128xf32>
    %c0_11 = arith.constant 0 : index
    %c0_12 = arith.constant 0 : index
    %23 = vector.load %arg7[%c0_11, %c0_12] : memref<1x128xf32, #tpu.memory_space<vmem>>, vector<1x128xf32>
    %cst_13 = arith.constant dense<0.000000e+00> : vector<128xf32>
    %24 = vector.multi_reduction <add>, %22, %cst_13 [0] : vector<3x128xf32> to vector<128xf32>
    %25 = vector.shape_cast %24 : vector<128xf32> to vector<1x128xf32>
    %26 = arith.mulf %25, %10 : vector<1x128xf32>
    %27 = arith.addf %23, %26 : vector<1x128xf32>
    %c0_14 = arith.constant 0 : index
    %c0_15 = arith.constant 0 : index
    %28 = vector.load %arg7[%c0_14, %c0_15] : memref<1x128xf32, #tpu.memory_space<vmem>>, vector<1x128xf32>
    tpu.vector_store %arg7[%c0_14, %c0_15], %27 {strides = array<i32>} : memref<1x128xf32, #tpu.memory_space<vmem>>, vector<1x128xf32>,
    %29 = vector.extract_strided_slice %3 {offsets = [3, 0], sizes = [3, 128], strides = [1, 1]} : vector<16x128xf32> to vector<3x128xf32>
    %cst_16 = arith.constant 0.00999999977 : f32
    %30 = vector.broadcast %cst_16 : f32 to vector<3x128xf32>
    %31 = arith.maximumf %29, %30 : vector<3x128xf32>
    %32 = math.log %31 : vector<3x128xf32>
    %33 = vector.extract_strided_slice %4 {offsets = [3, 0], sizes = [3, 128], strides = [1, 1]} : vector<16x128xf32> to vector<3x128xf32>
    %cst_17 = arith.constant 0.00999999977 : f32
    %34 = vector.broadcast %cst_17 : f32 to vector<3x128xf32>
    %35 = arith.maximumf %33, %34 : vector<3x128xf32>
    %36 = math.log %35 : vector<3x128xf32>
    %37 = arith.subf %32, %36 : vector<3x128xf32>
    %38 = math.absf %37 : vector<3x128xf32>
    %cst_18 = arith.constant 1.000000e+00 : f32
    %39 = vector.broadcast %cst_18 : f32 to vector<3x128xf32>
    %40 = arith.cmpf olt, %38, %39 : vector<3x128xf32>
    %cst_19 = arith.constant 5.000000e-01 : f32
    %41 = vector.broadcast %cst_19 : f32 to vector<3x128xf32>
    %42 = arith.mulf %41, %37 : vector<3x128xf32>
    %43 = arith.mulf %42, %37 : vector<3x128xf32>
    %cst_20 = arith.constant 5.000000e-01 : f32
    %44 = vector.broadcast %cst_20 : f32 to vector<3x128xf32>
    %45 = arith.subf %38, %44 : vector<3x128xf32>
    %46 = arith.select %40, %43, %45 : vector<3x128xi1>, vector<3x128xf32>
    %c0_21 = arith.constant 0 : index
    %c0_22 = arith.constant 0 : index
    %47 = vector.load %arg8[%c0_21, %c0_22] : memref<1x128xf32, #tpu.memory_space<vmem>>, vector<1x128xf32>
    %cst_23 = arith.constant dense<0.000000e+00> : vector<128xf32>
    %48 = vector.multi_reduction <add>, %46, %cst_23 [0] : vector<3x128xf32> to vector<128xf32>
    %49 = vector.shape_cast %48 : vector<128xf32> to vector<1x128xf32>
    %50 = arith.mulf %49, %10 : vector<1x128xf32>
    %51 = arith.addf %47, %50 : vector<1x128xf32>
    %c0_24 = arith.constant 0 : index
    %c0_25 = arith.constant 0 : index
    %52 = vector.load %arg8[%c0_24, %c0_25] : memref<1x128xf32, #tpu.memory_space<vmem>>, vector<1x128xf32>
    tpu.vector_store %arg8[%c0_24, %c0_25], %51 {strides = array<i32>} : memref<1x128xf32, #tpu.memory_space<vmem>>, vector<1x128xf32>,
    %53 = vector.extract_strided_slice %3 {offsets = [8, 0], sizes = [4, 128], strides = [1, 1]} : vector<16x128xf32> to vector<4x128xf32>
    %54 = vector.extract_strided_slice %4 {offsets = [8, 0], sizes = [4, 128], strides = [1, 1]} : vector<16x128xf32> to vector<4x128xf32>
    %55 = arith.mulf %53, %54 : vector<4x128xf32>
    %cst_26 = arith.constant dense<0.000000e+00> : vector<128xf32>
    %56 = vector.multi_reduction <add>, %55, %cst_26 [0] : vector<4x128xf32> to vector<128xf32>
    %57 = vector.shape_cast %56 : vector<128xf32> to vector<1x128xf32>
    %58 = arith.mulf %53, %53 : vector<4x128xf32>
    %cst_27 = arith.constant dense<0.000000e+00> : vector<128xf32>
    %59 = vector.multi_reduction <add>, %58, %cst_27 [0] : vector<4x128xf32> to vector<128xf32>
    %60 = vector.shape_cast %59 : vector<128xf32> to vector<1x128xf32>
    %61 = arith.mulf %54, %54 : vector<4x128xf32>
    %cst_28 = arith.constant dense<0.000000e+00> : vector<128xf32>
    %62 = vector.multi_reduction <add>, %61, %cst_28 [0] : vector<4x128xf32> to vector<128xf32>
    %63 = vector.shape_cast %62 : vector<128xf32> to vector<1x128xf32>
    %64 = arith.mulf %60, %63 : vector<1x128xf32>
    %cst_29 = arith.constant 1.000000e-24 : f32
    %65 = vector.broadcast %cst_29 : f32 to vector<1x128xf32>
    %66 = arith.maximumf %64, %65 : vector<1x128xf32>
    %67 = math.rsqrt %66 : vector<1x128xf32>
    %68 = math.absf %57 : vector<1x128xf32>
    %69 = arith.mulf %68, %67 : vector<1x128xf32>
    %cst_30 = arith.constant 0.000000e+00 : f32
    %cst_31 = arith.constant 1.000000e+00 : f32
    %70 = vector.broadcast %cst_30 : f32 to vector<1x128xf32>
    %71 = arith.maximumf %70, %69 : vector<1x128xf32>
    %72 = vector.broadcast %cst_31 : f32 to vector<1x128xf32>
    %73 = arith.minimumf %72, %71 : vector<1x128xf32>
    %c0_32 = arith.constant 0 : index
    %c0_33 = arith.constant 0 : index
    %74 = vector.load %arg9[%c0_32, %c0_33] : memref<1x128xf32, #tpu.memory_space<vmem>>, vector<1x128xf32>
    %cst_34 = arith.constant -0.0012624911 : f32
    %75 = vector.broadcast %cst_34 : f32 to vector<1x128xf32>
    %76 = arith.mulf %75, %73 : vector<1x128xf32>
    %cst_35 = arith.constant 6.670090e-03 : f32
    %77 = vector.broadcast %cst_35 : f32 to vector<1x128xf32>
    %78 = arith.addf %76, %77 : vector<1x128xf32>
    %79 = arith.mulf %78, %73 : vector<1x128xf32>
    %cst_36 = arith.constant -0.0170881264 : f32
    %80 = vector.broadcast %cst_36 : f32 to vector<1x128xf32>
    %81 = arith.addf %79, %80 : vector<1x128xf32>
    %82 = arith.mulf %81, %73 : vector<1x128xf32>
    %cst_37 = arith.constant 0.0308918804 : f32
    %83 = vector.broadcast %cst_37 : f32 to vector<1x128xf32>
    %84 = arith.addf %82, %83 : vector<1x128xf32>
    %85 = arith.mulf %84, %73 : vector<1x128xf32>
    %cst_38 = arith.constant -0.0501743034 : f32
    %86 = vector.broadcast %cst_38 : f32 to vector<1x128xf32>
    %87 = arith.addf %85, %86 : vector<1x128xf32>
    %88 = arith.mulf %87, %73 : vector<1x128xf32>
    %cst_39 = arith.constant 0.0889789909 : f32
    %89 = vector.broadcast %cst_39 : f32 to vector<1x128xf32>
    %90 = arith.addf %88, %89 : vector<1x128xf32>
    %91 = arith.mulf %90, %73 : vector<1x128xf32>
    %cst_40 = arith.constant -0.214598805 : f32
    %92 = vector.broadcast %cst_40 : f32 to vector<1x128xf32>
    %93 = arith.addf %91, %92 : vector<1x128xf32>
    %94 = arith.mulf %93, %73 : vector<1x128xf32>
    %cst_41 = arith.constant 1.57079625 : f32
    %95 = vector.broadcast %cst_41 : f32 to vector<1x128xf32>
    %96 = arith.addf %94, %95 : vector<1x128xf32>
    %cst_42 = arith.constant 1.000000e+00 : f32
    %97 = vector.broadcast %cst_42 : f32 to vector<1x128xf32>
    %98 = arith.subf %97, %73 : vector<1x128xf32>
    %cst_43 = arith.constant 0.000000e+00 : f32
    %99 = vector.broadcast %cst_43 : f32 to vector<1x128xf32>
    %100 = arith.maximumf %98, %99 : vector<1x128xf32>
    %101 = math.sqrt %100 : vector<1x128xf32>
    %102 = arith.mulf %101, %96 : vector<1x128xf32>
    %103 = arith.mulf %102, %10 : vector<1x128xf32>
    %104 = arith.addf %74, %103 : vector<1x128xf32>
    %c0_44 = arith.constant 0 : index
    %c0_45 = arith.constant 0 : index
    %105 = vector.load %arg9[%c0_44, %c0_45] : memref<1x128xf32, #tpu.memory_space<vmem>>, vector<1x128xf32>
    tpu.vector_store %arg9[%c0_44, %c0_45], %104 {strides = array<i32>} : memref<1x128xf32, #tpu.memory_space<vmem>>, vector<1x128xf32>,
    %cst_46 = arith.constant 1.000000e+00 : f32
    %106 = vector.broadcast %cst_46 : f32 to vector<1x128xf32>
    %107 = arith.subf %106, %5 : vector<1x128xf32>
    %108 = arith.select %8, %5, %107 : vector<1x128xi1>, vector<1x128xf32>
    %109 = math.log %108 : vector<1x128xf32>
    %cst_47 = arith.constant -1.000000e+02 : f32
    %110 = vector.broadcast %cst_47 : f32 to vector<1x128xf32>
    %111 = arith.maximumf %109, %110 : vector<1x128xf32>
    %cst_48 = arith.constant 0.000000e+00 : f32
    %112 = vector.broadcast %cst_48 : f32 to vector<1x128xf32>
    %113 = arith.subf %112, %111 : vector<1x128xf32>
    %cst_49 = arith.constant 2.500000e-01 : f32
    %cst_50 = arith.constant 7.500000e-01 : f32
    %114 = vector.broadcast %cst_49 : f32 to vector<1x128xf32>
    %115 = vector.broadcast %cst_50 : f32 to vector<1x128xf32>
    %116 = arith.select %8, %114, %115 : vector<1x128xi1>, vector<1x128xf32>
    %cst_51 = arith.constant 1.000000e+00 : f32
    %117 = vector.broadcast %cst_51 : f32 to vector<1x128xf32>
    %118 = arith.subf %117, %108 : vector<1x128xf32>
    %c0_52 = arith.constant 0 : index
    %c0_53 = arith.constant 0 : index
    %119 = vector.load %arg10[%c0_52, %c0_53] : memref<1x128xf32, #tpu.memory_space<vmem>>, vector<1x128xf32>
    %120 = arith.mulf %116, %118 : vector<1x128xf32>
    %121 = arith.mulf %120, %118 : vector<1x128xf32>
    %122 = arith.mulf %121, %113 : vector<1x128xf32>
    %123 = arith.addf %119, %122 : vector<1x128xf32>
    %c0_54 = arith.constant 0 : index
    %c0_55 = arith.constant 0 : index
    %124 = vector.load %arg10[%c0_54, %c0_55] : memref<1x128xf32, #tpu.memory_space<vmem>>, vector<1x128xf32>
    tpu.vector_store %arg10[%c0_54, %c0_55], %123 {strides = array<i32>} : memref<1x128xf32, #tpu.memory_space<vmem>>, vector<1x128xf32>,
    %c0_56 = arith.constant 0 : index
    %c0_57 = arith.constant 0 : index
    %125 = vector.load %arg11[%c0_56, %c0_57] : memref<1x128xf32, #tpu.memory_space<vmem>>, vector<1x128xf32>
    %126 = arith.addf %125, %10 : vector<1x128xf32>
    %c0_58 = arith.constant 0 : index
    %c0_59 = arith.constant 0 : index
    %127 = vector.load %arg11[%c0_58, %c0_59] : memref<1x128xf32, #tpu.memory_space<vmem>>, vector<1x128xf32>
    tpu.vector_store %arg11[%c0_58, %c0_59], %126 {strides = array<i32>} : memref<1x128xf32, #tpu.memory_space<vmem>>, vector<1x128xf32>,
    %c0_i32_60 = arith.constant 0 : i32
    %128 = arith.cmpi eq, %arg1, %c0_i32_60 : i32
    %129 = arith.extui %128 : i1 to i32
    %c0_i32_61 = arith.constant 0 : i32
    %130 = arith.cmpi ne, %129, %c0_i32_61 : i32
    scf.if %130 {
      %c0_62 = arith.constant 0 : index
      %c0_63 = arith.constant 0 : index
      %131 = vector.load %arg7[%c0_62, %c0_63] : memref<1x128xf32, #tpu.memory_space<vmem>>, vector<1x128xf32>
      %c0_64 = arith.constant 0 : index
      %c0_65 = arith.constant 0 : index
      %132 = vector.load %arg8[%c0_64, %c0_65] : memref<1x128xf32, #tpu.memory_space<vmem>>, vector<1x128xf32>
      %c0_66 = arith.constant 0 : index
      %c0_67 = arith.constant 0 : index
      %133 = vector.load %arg9[%c0_66, %c0_67] : memref<1x128xf32, #tpu.memory_space<vmem>>, vector<1x128xf32>
      %c0_68 = arith.constant 0 : index
      %c0_69 = arith.constant 0 : index
      %134 = vector.load %arg10[%c0_68, %c0_69] : memref<1x128xf32, #tpu.memory_space<vmem>>, vector<1x128xf32>
      %c0_70 = arith.constant 0 : index
      %c0_71 = arith.constant 0 : index
      %135 = vector.load %arg11[%c0_70, %c0_71] : memref<1x128xf32, #tpu.memory_space<vmem>>, vector<1x128xf32>
      %cst_72 = arith.constant 0.000000e+00 : f32
      %136 = vector.broadcast %cst_72 : f32 to vector<3x128xf32>
      %137 = tpu.concatenate %131, %132, %133, %134, %135, %136 in 0 : vector<1x128xf32>, vector<1x128xf32>, vector<1x128xf32>, vector<1x128xf32>, vector<1x128xf32>, vector<3x128xf32> -> vector<8x128xf32>
      %c0_73 = arith.constant 0 : index
      %c0_74 = arith.constant 0 : index
      %c0_75 = arith.constant 0 : index
      %138 = vector.load %arg6[%c0_73, %c0_74, %c0_75] : memref<1x8x128xf32, #tpu.memory_space<vmem>>, vector<1x8x128xf32>
      %139 = vector.shape_cast %138 : vector<1x8x128xf32> to vector<8x128xf32>
      %140 = vector.shape_cast %137 : vector<8x128xf32> to vector<1x8x128xf32>
      tpu.vector_store %arg6[%c0_73, %c0_74, %c0_75], %140 {strides = array<i32>} : memref<1x8x128xf32, #tpu.memory_space<vmem>>, vector<1x8x128xf32>,
    } else {
    }
    return
  }
  func.func @transform_0(%arg0: i32, %arg1: i32) -> (i32, i32) {
    %c1_i32 = arith.constant 1 : i32
    %0 = arith.muli %arg0, %c1_i32 : i32
    %1 = arith.addi %0, %arg1 : i32
    %c0_i32 = arith.constant 0 : i32
    %c0_i32_0 = arith.constant 0 : i32
    return %c0_i32, %1 : i32, i32
  }
  func.func @transform_1(%arg0: i32, %arg1: i32) -> (i32, i32) {
    %c1_i32 = arith.constant 1 : i32
    %0 = arith.muli %arg0, %c1_i32 : i32
    %1 = arith.addi %0, %arg1 : i32
    %c0_i32 = arith.constant 0 : i32
    %c0_i32_0 = arith.constant 0 : i32
    return %c0_i32, %1 : i32, i32
  }
  func.func @transform_2(%arg0: i32, %arg1: i32) -> (i32, i32) {
    %c1_i32 = arith.constant 1 : i32
    %0 = arith.muli %arg0, %c1_i32 : i32
    %1 = arith.addi %0, %arg1 : i32
    %c0_i32 = arith.constant 0 : i32
    %c0_i32_0 = arith.constant 0 : i32
    return %c0_i32, %1 : i32, i32
  }
  func.func @transform_3(%arg0: i32, %arg1: i32) -> (i32, i32) {
    %c1_i32 = arith.constant 1 : i32
    %0 = arith.muli %arg0, %c1_i32 : i32
    %1 = arith.addi %0, %arg1 : i32
    %c0_i32 = arith.constant 0 : i32
    %c0_i32_0 = arith.constant 0 : i32
    return %c0_i32, %1 : i32, i32
  }
  func.func @transform_4(%arg0: i32, %arg1: i32) -> (i32, i32, i32) {
    %c0_i32 = arith.constant 0 : i32
    %c0_i32_0 = arith.constant 0 : i32
    %c0_i32_1 = arith.constant 0 : i32
    return %arg0, %c0_i32, %c0_i32_0 : i32, i32, i32
  }
}

</mosaic_0001>

<bundles_post_ra>
// kernel: tpu_custom_call.1
= control target key start
LH: loop header
LB: loop body
LE: loop exit
PB: predicated region body
PF: predicated region fallthrough
CT: control target
= control target key end

     0   :  { %9 = vsyncpa [#allocation8], 0  ;;  %s472_s0 = inlined_call_operand.hbm [shape: f32[16,128], index: 0, kind: input, shape index: {}]   ;;  %s473_s1 = inlined_call_operand.hbm [shape: f32[16,128], index: 1, kind: input, shape index: {}]   ;;  %s474_s2 = inlined_call_operand.vmem [shape: f32[1,128], index: 2, kind: input, shape index: {}]   ;;  %s475_s3 = inlined_call_operand.vmem [shape: f32[1,128], index: 3, kind: input, shape index: {}]   ;;  %s476_s4 = inlined_call_operand.hbm [shape: f32[1,8,128], index: 4, kind: output, shape index: {}]  }
   0x1   :  { %10 = vsyncpa [#allocation11], 0 }
   0x2   :  { %11 = vsyncpa [#allocation9], 0  ;;  %s382_s15 = smov [#allocation7]   ;;  %s310_s19 = scalar_lea.hbm %s472_s0, 256 }
   0x3   :  { %s20_s16 = sshll.u32 %s382_s15, 4  ;;  %p311_p0 = scmp.ne.s32.totalorder %s472_s0, %s310_s19  ;;  %s21_s16 = int_to_ptr.vmem [resolvable:$true] %s20_s16 }
   0x4   :  { %p314_p1 = scmp.lt.u32.totalorder %s310_s19, %s472_s0 }
   0x6   :  { %p316_p2 = pnand %p314_p1, %p311_p0 }
   0x8   :  { %319 = shalt.err (!%p316_p2)
}
   0x9   :  { %s320_s24 = scalar_lea.vmem %s21_s16, 256  ;;  %p325_p4 = scmp.lt.s32.totalorder %s21_s16, %s21_s16 }
   0xa   :  { %p321_p3 = scmp.ne.s32.totalorder %s21_s16, %s320_s24  ;;  %p326_p5 = scmp.lt.s32.totalorder %s320_s24, %s320_s24 }
   0xc   :  { %p327_p6 = por %p326_p5, %p325_p4 }
   0xe   :  { %p328_p7 = pnand %p327_p6, %p321_p3 }
  0x10   :  { %331 = shalt.err (!%p328_p7)
}
  0x11   :  { %s383_s25 = smov 128   ;;  %s384_s26 = smov 8  }
  0x12   :  { %26 = dma.hbm_to_vmem [thread:$0]  %s472_s0, 256, %s21_s16, [#allocation8], %s383_s25, %s383_s25, %s384_s26  }
  0x13   :  { %s385_s29 = smov [#allocation10]   ;;  %s332_s7 = scalar_lea.hbm %s473_s1, 256 }
  0x14   :  { %s35_s30 = sshll.u32 %s385_s29, 4  ;;  %p333_p8 = scmp.ne.s32.totalorder %s473_s1, %s332_s7  ;;  %s36_s30 = int_to_ptr.vmem [resolvable:$true] %s35_s30 }
  0x15   :  { %p336_p9 = scmp.lt.u32.totalorder %s332_s7, %s473_s1 }
  0x17   :  { %p338_p10 = pnand %p336_p9, %p333_p8 }
  0x19   :  { %341 = shalt.err (!%p338_p10)
}
  0x1a   :  { %s342_s12 = scalar_lea.vmem %s36_s30, 256  ;;  %p347_p12 = scmp.lt.s32.totalorder %s36_s30, %s36_s30 }
  0x1b   :  { %p343_p11 = scmp.ne.s32.totalorder %s36_s30, %s342_s12  ;;  %p348_p13 = scmp.lt.s32.totalorder %s342_s12, %s342_s12 }
  0x1d   :  { %p349_p0 = por %p348_p13, %p347_p12 }
  0x1f   :  { %p350_p1 = pnand %p349_p0, %p343_p11 }
  0x21   :  { %353 = shalt.err (!%p350_p1)
}
  0x22   :  { %41 = dma.hbm_to_vmem [thread:$0]  %s473_s1, 256, %s36_s30, [#allocation11], %s383_s25, %s383_s25, %s384_s26  }
  0x23   :  { %376 = dma.done.wait [#allocation8], 256  }
  0x24   :  { %377 = vsyncadd [#allocation8], 4294967040 }
  0x25   :  { %378 = dma.done.wait [#allocation11], 256  }
  0x26   :  { %379 = vsyncadd [#allocation11], 4294967040  ;;  %v386_v0 = vmov 0.0   ;;  %v91_v1 = vld [vmem:[#allocation7] sm:$0xff]  ;;  %v93_v2 = vld [vmem:[#allocation10] sm:$0xff]  ;;  %vm147_vm0 = vcmask 1043456  }
  0x27   :  { %86 = vst [vmem:[#allocation2] sm:$0x1] %v386_v0  ;;  %87 = vst [vmem:[#allocation3] sm:$0x1] %v386_v0  ;;  %v96_v3 = vld [vmem:[%s475_s3] sm:$0x1]  ;;  %v100_v4 = vsub.f32 %v91_v1, %v93_v2 }
  0x28   :  { %88 = vst [vmem:[#allocation4] sm:$0x1] %v386_v0  ;;  %89 = vst [vmem:[#allocation5] sm:$0x1] %v386_v0  ;;  %v119_v5 = vmax.f32 %v91_v1, 0.01 }
  0x29   :  { %90 = vst [vmem:[#allocation6] sm:$0x1] %v386_v0  ;;  %v92_v6 = vld [vmem:[#allocation7 + $0x8] sm:$0xff]  ;;  %vm97_vm1 = vcmp.gt.f32.partialorder %v96_v3, 0.5  ;;  %vm108_vm2 = vcmask 1042432   ;;  %v94_v8 = vld [vmem:[#allocation10 + $0x8] sm:$0xff] }
  0x2a   :  { %v122_v7 = vmax.f32 %v93_v2, 0.01  ;;  %v155_v9 = vmul.f32 %v92_v6, %v92_v6  ;;  %v101_v10 = vand.u32 2147483647, %v100_v4  ;;  %v103_v11 = vmul.f32 0.5, %v100_v4 }
  0x2b   :  { %300 = vlog2.f32 %v119_v5  ;;  %v146_v12 = vmul.f32 %v94_v8, %v92_v6  ;;  %v442_v13 = vsel %vm97_vm1, 1.0, %v386_v0  ;;  %v163_v15 = vmul.f32 %v94_v8, %v94_v8  ;;  %v95_v16 = vld [vmem:[%s474_s2] sm:$0x1]  ;;  %s388_s2 = smov [#allocation12]  }
  0x2c   :  { %302 = vlog2.f32 %v122_v7  ;;  %v156_v14 = vsel %vm147_vm0, %v155_v9, 0.0  ;;  %vm102_vm3 = vcmp.lt.f32.partialorder %v101_v10, 1.0  ;;  %v104_v17 = vmul.f32 %v103_v11, %v100_v4  ;;  %s270_s16 = sshll.u32 %s388_s2, 4  ;;  %s271_s16 = int_to_ptr.vmem [resolvable:$true] %s270_s16 }
  0x2d   :  { %v287_v18 = vadd.f32 -0.5, %v101_v10  ;;  %v148_v19 = vsel %vm147_vm0, %v146_v12, 0.0  ;;  %v157_v22 = vrot.slane %v156_v14, 4  ;;  %v164_v23 = vsel %vm147_vm0, %v163_v15, 0.0  ;;  %s354_s17 = scalar_lea.vmem %s271_s16, 128  ;;  %p359_p3 = scmp.lt.s32.totalorder %s271_s16, %s271_s16 }
  0x2e   :  { %v149_v21 = vrot.slane %v148_v19, 4  ;;  %v206_v24 = vsub.f32 1.0, %v95_v16  ;;  %v165_v26 = vrot.slane %v164_v23, 4  ;;  %v387_v49 = vmov 0.75   ;;  %v107_v62 = vld [vmem:[#allocation2] sm:$0x1]  ;;  %p355_p2 = scmp.ne.s32.totalorder %s271_s16, %s354_s17  ;;  %p360_p4 = scmp.lt.s32.totalorder %s354_s17, %s354_s17 }
  0x2f   :  { %v106_v25 = vsel %vm102_vm3, %v104_v17, %v287_v18  ;;  %v158_v29 = vadd.f32 %v157_v22, %v156_v14  ;;  %v212_v50 = vsel %vm97_vm1, 0.25, %v387_v49  ;;  %v214_v11 = vld [vmem:[#allocation5] sm:$0x1]  ;;  %vm255_vm7 = vcmask 1040384  }
  0x30   :  { %v220_v20 = vld [vmem:[#allocation6] sm:$0x1]  ;;  %v109_v28 = vsel %vm108_vm2, %v106_v25, 0.0  ;;  %v207_v30 = vsel %vm97_vm1, %v95_v16, %v206_v24  ;;  %v166_v32 = vadd.f32 %v165_v26, %v164_v23  ;;  %v150_v33 = vadd.f32 %v149_v21, %v148_v19  ;;  %p361_p5 = por %p360_p4, %p359_p3 }
  0x31   :  { %v221_v27 = vadd.f32 %v442_v13, %v220_v20  ;;  %v110_v31 = vrot.slane %v109_v28, 4  ;;  %304 = vlog2.f32 %v207_v30  ;;  %v159_v34 = vrot.slane %v158_v29, 2 }
  0x32   :  { %v167_v36 = vrot.slane %v166_v32, 2  ;;  %v151_v43 = vrot.slane %v150_v33, 2  ;;  %v213_v45 = vsub.f32 1.0, %v207_v30  ;;  %vm257_vm8 = vcmask 1041408   ;;  %p362_p6 = pnand %p361_p5, %p355_p2 }
  0x33   :  { %222 = vst [vmem:[#allocation6] sm:$0x1] %v221_v27  ;;  %v111_v35 = vadd.f32 %v110_v31, %v109_v28  ;;  %v160_v37 = vadd.f32 %v159_v34, %v158_v29  ;;  %v132_v27 = vld [vmem:[#allocation3] sm:$0x1]  ;;  %vm261_vm9 = vcmask 1044480  }
  0x34   :  { %v168_v40 = vadd.f32 %v167_v36, %v166_v32  ;;  %v152_v55 = vadd.f32 %v151_v43, %v150_v33  ;;  %v215_v56 = vmul.f32 %v213_v45, %v212_v50 }
  0x35   :  { %v301_v38 = vpop.eup %300  ;;  %v112_v39 = vrot.slane %v111_v35, 2  ;;  %v161_v44 = vrot.slane %v160_v37, 1 }
  0x36   :  { %v303_v41 = vpop.eup %302  ;;  %v121_v42 = vmul.f32 0.6931472, %v301_v38  ;;  %v169_v48 = vrot.slane %v168_v40, 1  ;;  %v216_v5 = vmul.f32 %v215_v56, %v213_v45  ;;  %v153_v8 = vrot.slane %v152_v55, 1 }
  0x37   :  { %v113_v46 = vadd.f32 %v112_v39, %v111_v35  ;;  %v124_v47 = vmul.f32 0.6931472, %v303_v41  ;;  %v162_v51 = vadd.f32 %v161_v44, %v160_v37 }
  0x38   :  { %v170_v54 = vadd.f32 %v169_v48, %v168_v40  ;;  %v154_v16 = vadd.f32 %v153_v8, %v152_v55 }
  0x39   :  { %v114_v52 = vrot.slane %v113_v46, 1  ;;  %v125_v53 = vsub.f32 %v121_v42, %v124_v47 }
  0x3a   :  { %v171_v61 = vmul.f32 %v170_v54, %v162_v51  ;;  %v174_v20 = vand.u32 2147483647, %v154_v16 }
  0x3b   :  { %v305_v57 = vpop.eup %304  ;;  %v115_v58 = vadd.f32 %v114_v52, %v113_v46  ;;  %v126_v59 = vand.u32 2147483647, %v125_v53  ;;  %v128_v60 = vmul.f32 0.5, %v125_v53 }
  0x3c   :  { %v209_v63 = vmul.f32 0.6931472, %v305_v57  ;;  %v172_v3 = vmax.f32 %v171_v61, 1e-24  ;;  %v292_v61 = vld [vmem:[#allocation6] ss:$0 sm:$0xff] }
  0x3d   :  { %v116_v0 = vmul.f32 %v442_v13, %v115_v58  ;;  %vm127_vm4 = vcmp.lt.f32.partialorder %v126_v59, 1.0  ;;  %v129_v1 = vmul.f32 %v128_v60, %v125_v53  ;;  %v288_v2 = vadd.f32 -0.5, %v126_v59  ;;  %v178_v53 = vld [vmem:[#allocation4] sm:$0x1] }
  0x3e   :  { %v210_v4 = vmax.f32 %v209_v63, -100.0  ;;  %306 = vrsqrt.f32 %v172_v3 }
  0x3f   :  { %v117_v6 = vadd.f32 %v116_v0, %v107_v62  ;;  %v131_v7 = vsel %vm127_vm4, %v129_v1, %v288_v2 }
  0x40   :  { %v134_v9 = vrot.slane %v131_v7, 3  ;;  %v211_v10 = vsub.f32 0.0, %v210_v4 }
  0x41   :  { %118 = vst [vmem:[#allocation2] sm:$0x1] %v117_v6 }
  0x42   :  { %v136_v12 = vsel %vm108_vm2, %v134_v9, 0.0  ;;  %v217_v14 = vmul.f32 %v216_v5, %v211_v10 }
  0x43   :  { %v137_v15 = vrot.slane %v136_v12, 4 }
  0x44   :  { %v218_v17 = vadd.f32 %v217_v14, %v214_v11 }
  0x45   :  { %v138_v18 = vadd.f32 %v137_v15, %v136_v12 }
  0x46   :  { %219 = vst [vmem:[#allocation5] sm:$0x1] %v218_v17 }
  0x47   :  { %v139_v19 = vrot.slane %v138_v18, 2 }
  0x48   :  { %v307_v22 = vpop.eup %306  ;;  %v226_v56 = vld [vmem:[#allocation2] sm:$0x1] }
  0x49   :  { %v140_v21 = vadd.f32 %v139_v19, %v138_v18  ;;  %v175_v24 = vmul.f32 %v307_v22, %v174_v20 }
  0x4b   :  { %v141_v23 = vrot.slane %v140_v21, 1  ;;  %v176_v26 = vmax.f32 %v175_v24, 0.0 }
  0x4d   :  { %v142_v25 = vadd.f32 %v141_v23, %v140_v21  ;;  %v177_v29 = vmin.f32 %v176_v26, 1.0  ;;  %v291_v59 = vld [vmem:[#allocation5] ss:$0 sm:$0xff] }
  0x4f   :  { %v143_v28 = vmul.f32 %v442_v13, %v142_v25  ;;  %v179_v31 = vmul.f32 -0.0012624911, %v177_v29  ;;  %v193_v32 = vsub.f32 1.0, %v177_v29 }
  0x51   :  { %v144_v30 = vadd.f32 %v143_v28, %v132_v27  ;;  %v180_v33 = vadd.f32 0.00667009, %v179_v31  ;;  %v194_v34 = vmax.f32 %v193_v32, 0.0 }
  0x53   :  { %145 = vst [vmem:[#allocation3] sm:$0x1] %v144_v30  ;;  %v181_v35 = vmul.f32 %v180_v33, %v177_v29  ;;  %308 = vrsqrt.f32 %v194_v34  ;;  %vm197_vm5 = vcmp.eq.f32.partialorder %v194_v34, inf  ;;  %v200_v46 = vand.u32 2147483648, %v194_v34 }
  0x54   :  { %vm199_vm6 = vcmp.eq.f32.partialorder %v194_v34, 0.0 }
  0x55   :  { %v182_v36 = vadd.f32 -0.017088126, %v181_v35 }
  0x57   :  { %v183_v37 = vmul.f32 %v182_v36, %v177_v29 }
  0x59   :  { %v184_v38 = vadd.f32 0.03089188, %v183_v37 }
  0x5a   :  { %v289_v57 = vld [vmem:[#allocation3] ss:$0 sm:$0xff] }
  0x5b   :  { %v185_v39 = vmul.f32 %v184_v38, %v177_v29  ;;  %v256_v58 = vsel %vm255_vm7, %v226_v56, %v289_v57 }
  0x5d   :  { %v186_v40 = vadd.f32 -0.050174303, %v185_v39  ;;  %v309_v41 = vpop.eup %308 }
  0x5e   :  { %v196_v44 = vmul.f32 %v309_v41, %v194_v34 }
  0x5f   :  { %v187_v42 = vmul.f32 %v186_v40, %v177_v29 }
  0x60   :  { %v198_v48 = vsel %vm197_vm5, %v194_v34, %v196_v44 }
  0x61   :  { %v188_v43 = vadd.f32 0.08897899, %v187_v42  ;;  %v201_v50 = vsel %vm199_vm6, %v200_v46, %v198_v48 }
  0x63   :  { %v189_v45 = vmul.f32 %v188_v43, %v177_v29 }
  0x65   :  { %v190_v47 = vadd.f32 -0.2145988, %v189_v45 }
  0x67   :  { %v191_v49 = vmul.f32 %v190_v47, %v177_v29 }
  0x69   :  { %v192_v51 = vadd.f32 1.5707963, %v191_v49 }
  0x6b   :  { %v202_v52 = vmul.f32 %v201_v50, %v192_v51 }
  0x6d   :  { %v203_v54 = vmul.f32 %v442_v13, %v202_v52 }
  0x6f   :  { %v204_v55 = vadd.f32 %v203_v54, %v178_v53 }
  0x71   :  { %205 = vst [vmem:[#allocation4] sm:$0x1] %v204_v55 }
  0x78   :  { %v290_v60 = vld [vmem:[#allocation4] ss:$0 sm:$0xff] }
  0x79   :  { %v258_v62 = vsel %vm257_vm8, %v256_v58, %v290_v60 }
  0x7a   :  { %v259_v63 = vsel %vm108_vm2, %v258_v62, %v291_v59 }
  0x7b   :  { %v260_v0 = vsel %vm147_vm0, %v259_v63, %v292_v61 }
  0x7c   :  { %v262_v13 = vsel %vm261_vm9, %v260_v0, 0.0 }
  0x7d   :  { %263 = vst [vmem:[#allocation12] sm:$0xff] %v262_v13 }
  0x7e   :  { %365 = shalt.err (!%p362_p6)
}
  0x7f   :  { %s366_s20 = scalar_lea.hbm %s476_s4, 128 }
  0x80   :  { %p367_p7 = scmp.ne.s32.totalorder %s476_s4, %s366_s20  ;;  %p370_p8 = scmp.lt.u32.totalorder %s366_s20, %s476_s4 }
  0x82   :  { %p372_p9 = pnand %p370_p8, %p367_p7 }
  0x84   :  { %375 = shalt.err (!%p372_p9)
}
  0x85   :  { %273 = dma.vmem_to_hbm [thread:$0]  %s271_s16, 128, %s476_s4, [#allocation9]  }
  0x86   :  { %380 = dma.done.wait [#allocation9], 128  }
  0x87   :  { %381 = vsyncadd [#allocation9], 4294967168 }
  0x88   :  { %277 = vsyncpa [#allocation8], 1 }
  0x89   :  { %278 = vsyncpa [#allocation11], 1 }
  0x8a   :  { %279 = vsyncpa [#allocation9], 1 }

</bundles_post_ra>
